<compile_context>
chip_gen: v6e
topology: v6e:2x2x1
jax: 0.10.0
libtpu: 0.0.40
codegen_flags: <defaults>
</compile_context>

<pallas_src>
import functools

import jax
import jax.numpy as jnp
from jax import lax
from jax.experimental import pallas as pl
from jax.experimental.pallas import tpu as pltpu

# Scoped VMEM budget: >= v5e default (16 MiB), <= every generation's physical.
_VMEM_LIMIT = 32 * 1024 * 1024


def _round_up(x, m):
    return (x + m - 1) // m * m


def _depthwise(h, w, K, P, L, center_zero):
    """out[c, n] = sum_k w[c, k] * h[c, n + k - P] with zero edge padding.

    h: (C, Lp) lane-dense slab (lanes >= L are padding), w: (C, K).
    Tap shifts run on the XLU via pltpu.roll; per-tap edge masks come from a
    compile-time iota + compares (a few VPU ops, no mask tensor in HBM).
    """
    Lp = h.shape[-1]
    pos = lax.broadcasted_iota(jnp.int32, (1, Lp), 1)
    out = jnp.zeros_like(h)
    for k in range(K):                                   # static tap loop
        shift = (P - k) % Lp
        shifted = h if shift == 0 else pltpu.roll(h, shift, axis=1)
        term = shifted * w[:, k:k + 1]
        lo = max(0, P - k)               # valid output-lane range for tap k
        hi = min(L, L + P - k)
        need_mask = not (lo == 0 and hi == Lp)           # identity mask -> skip
        if k == P and center_zero:       # padding lanes of h already zero
            need_mask = False
        if need_mask:
            mask = ((pos >= lo) & (pos < hi)).astype(h.dtype)
            term = term * mask
        out = out + term
    return out


def _stage1_kernel(K, P, L, x_ref, wd_ref, wp_ref, h_ref, s1_ref, s2_ref):
    """ReLU -> depthwise conv -> pointwise 1x1; emits partial BN1 stats."""
    h = jnp.maximum(x_ref[0], 0.0)                                 # ReLU
    h = _depthwise(h, wd_ref[...], K, P, L, center_zero=True)      # depthwise
    h = jnp.dot(wp_ref[...], h, preferred_element_type=jnp.float32)  # 1x1 (MXU)
    h_ref[0] = h
    # Padding lanes / padded channel rows of h are exactly zero here, so the
    # unmasked sums are exact; the wrapper divides by the true count B*L.
    s1_ref[0] = jnp.sum(h, axis=1, keepdims=True)
    s2_ref[0] = jnp.sum(h * h, axis=1, keepdims=True)


def _stage2_kernel(K, P, L, h1_ref, wd_ref, wp_ref, sc_ref, bi_ref,
                   h2_ref, s1_ref, s2_ref):
    """BN1-apply (folded FMA) -> ReLU -> depthwise -> pointwise; BN2 partials."""
    h = h1_ref[0] * sc_ref[...] + bi_ref[...]                      # BN1 apply
    h = jnp.maximum(h, 0.0)                                        # ReLU
    h = _depthwise(h, wd_ref[...], K, P, L, center_zero=False)
    h = jnp.dot(wp_ref[...], h, preferred_element_type=jnp.float32)
    h2_ref[0] = h
    s1_ref[0] = jnp.sum(h, axis=1, keepdims=True)
    s2_ref[0] = jnp.sum(h * h, axis=1, keepdims=True)


def _bn_apply_kernel(C_out, L, h_ref, sc_ref, bi_ref, o_ref):
    """BN2 apply + crop straight into the module's native (C_out, L) layout."""
    h = h_ref[0] * sc_ref[...] + bi_ref[...]
    o_ref[0] = h[:C_out, :L]


def _fold_bn(s1_parts, s2_parts, gamma, beta, count, eps):
    """Reduce per-block partial sums into folded BN scale/bias (tiny XLA)."""
    s1 = jnp.sum(s1_parts, axis=0)                       # (C, 1)
    s2 = jnp.sum(s2_parts, axis=0)
    mean = s1 / count
    # One-pass (biased) variance, clamped against tiny negative rounding.
    # TODO(synk): switch to a shifted/two-pass variance if activation scale
    # grows enough for E[x^2]-E[x]^2 cancellation to matter.
    var = jnp.maximum(s2 / count - mean * mean, 0.0)
    scale = gamma * lax.rsqrt(var + eps)
    bias = beta - mean * scale
    return scale, bias


def sepconv1d(x, params, *, kernel_size, padding, eps=1e-5):
    B, C_in, L = x.shape
    C_out = params["wp2"].shape[0]
    K, P = kernel_size, padding

    if 2 * P != K - 1:
        # TODO(synk): only the length-preserving case (2*padding == K-1) is
        # implemented; other paddings change L between stages.
        raise NotImplementedError("sepconv1d needs 2*padding == kernel_size-1")

    Ci = _round_up(C_in, 8)       # channels on sublanes
    Co = _round_up(C_out, 8)
    Lp = _round_up(L, 128)        # sequence on lanes
    n_valid = float(B * L)

    # Native NCL layout; zero-pad only when C/L are not (8,128)-aligned.
    xp = x if (Ci, Lp) == (C_in, L) else jnp.pad(
        x, ((0, 0), (0, Ci - C_in), (0, Lp - L)))

    # Zero-padded parameters (padded channels stay exactly zero end-to-end).
    wd1 = jnp.pad(params["wd1"], ((0, Ci - C_in), (0, 0)))            # (Ci, K)
    wd2 = jnp.pad(params["wd2"], ((0, Ci - C_in), (0, 0)))            # (Ci, K)
    wp1 = jnp.pad(params["wp1"], ((0, Ci - C_in), (0, Ci - C_in)))    # (Ci, Ci)
    wp2 = jnp.pad(params["wp2"], ((0, Co - C_out), (0, Ci - C_in)))   # (Co, Ci)
    g1 = jnp.pad(params["g1"], ((0, Ci - C_in), (0, 0)))              # (Ci, 1)
    b1 = jnp.pad(params["b1"], ((0, Ci - C_in), (0, 0)))
    g2 = jnp.pad(params["g2"], ((0, Co - C_out), (0, 0)))             # (Co, 1)
    b2 = jnp.pad(params["b2"], ((0, Co - C_out), (0, 0)))

    # TODO(synk): for very long sequences also tile the L (lane) axis with a
    # K-1 halo per tile; the partial-stats reduction already supports it.
    # TODO(synk): optionally carry h1/h2 as bf16 for HBM I/O on v6e/v7x.
    grid = (B,)
    cparams = pltpu.CompilerParams(dimension_semantics=("parallel",),
                                   vmem_limit_bytes=_VMEM_LIMIT)

    def act_spec(C):
        return pl.BlockSpec((1, C, Lp), lambda b: (b, 0, 0))

    def stat_spec(C):
        return pl.BlockSpec((1, C, 1), lambda b: (b, 0, 0))

    def full2d(shape):
        return pl.BlockSpec(shape, lambda b: (0, 0))

    dw_flops = 3 * K * Ci * Lp
    pw1_flops = 2 * Ci * Ci * Lp
    pw2_flops = 2 * Co * Ci * Lp

    # ---- pass 1: ReLU -> dw1 -> pw1, partial BN1 stats ----------------------
    h1, s1a, s2a = pl.pallas_call(
        functools.partial(_stage1_kernel, K, P, L),
        grid=grid,
        in_specs=[act_spec(Ci), full2d((Ci, K)), full2d((Ci, Ci))],
        out_specs=[act_spec(Ci), stat_spec(Ci), stat_spec(Ci)],
        out_shape=[jax.ShapeDtypeStruct((B, Ci, Lp), jnp.float32),
                   jax.ShapeDtypeStruct((B, Ci, 1), jnp.float32),
                   jax.ShapeDtypeStruct((B, Ci, 1), jnp.float32)],
        compiler_params=cparams,
        cost_estimate=pl.CostEstimate(
            flops=B * (dw_flops + pw1_flops + 4 * Ci * Lp),
            transcendentals=0,
            bytes_accessed=4 * (2 * B * Ci * Lp + Ci * K + Ci * Ci)),
    )(xp, wd1, wp1)

    scale1, bias1 = _fold_bn(s1a, s2a, g1, b1, n_valid, eps)

    # ---- pass 2: BN1 apply -> ReLU -> dw2 -> pw2, partial BN2 stats ----------
    h2, s1b, s2b = pl.pallas_call(
        functools.partial(_stage2_kernel, K, P, L),
        grid=grid,
        in_specs=[act_spec(Ci), full2d((Ci, K)), full2d((Co, Ci)),
                  full2d((Ci, 1)), full2d((Ci, 1))],
        out_specs=[act_spec(Co), stat_spec(Co), stat_spec(Co)],
        out_shape=[jax.ShapeDtypeStruct((B, Co, Lp), jnp.float32),
                   jax.ShapeDtypeStruct((B, Co, 1), jnp.float32),
                   jax.ShapeDtypeStruct((B, Co, 1), jnp.float32)],
        compiler_params=cparams,
        cost_estimate=pl.CostEstimate(
            flops=B * (dw_flops + pw2_flops + 4 * Ci * Lp + 3 * Co * Lp),
            transcendentals=0,
            bytes_accessed=4 * (B * Ci * Lp + B * Co * Lp + Ci * K + Co * Ci)),
    )(h1, wd2, wp2, scale1, bias1)

    scale2, bias2 = _fold_bn(s1b, s2b, g2, b2, n_valid, eps)

    # ---- pass 3: BN2 apply, write native NCL output --------------------------
    out = pl.pallas_call(
        functools.partial(_bn_apply_kernel, C_out, L),
        grid=grid,
        in_specs=[act_spec(Co), full2d((Co, 1)), full2d((Co, 1))],
        out_specs=pl.BlockSpec((1, C_out, L), lambda b: (b, 0, 0)),
        out_shape=jax.ShapeDtypeStruct((B, C_out, L), jnp.float32),
        compiler_params=cparams,
        cost_estimate=pl.CostEstimate(
            flops=2 * B * Co * Lp,
            transcendentals=0,
            bytes_accessed=4 * (B * Co * Lp + B * C_out * L)),
    )(h2, scale2, bias2)

    return out


def _reference(x, params, *, kernel_size, padding, eps=1e-5):
    """Pure-JAX reference using lax.conv_general_dilated (matches PyTorch)."""
    C_in = x.shape[1]
    dn = ("NCH", "OIH", "NCH")

    def dw(h, w):  # grouped conv, weight (C, K)
        return lax.conv_general_dilated(h, w[:, None, :], (1,),
                                        [(padding, padding)],
                                        feature_group_count=C_in,
                                        dimension_numbers=dn)

    def pw(h, w):  # 1x1 conv, weight (O, C)
        return lax.conv_general_dilated(h, w[:, :, None], (1,), "VALID",
                                        dimension_numbers=dn)

    def bn(h, g, b):
        mean = jnp.mean(h, axis=(0, 2), keepdims=True)
        var = jnp.mean((h - mean) ** 2, axis=(0, 2), keepdims=True)
        return (h - mean) * lax.rsqrt(var + eps) * g[None] + b[None]

    h = jnp.maximum(x, 0.0)
    h = dw(h, params["wd1"]); h = pw(h, params["wp1"])
    h = bn(h, params["g1"], params["b1"])
    h = jnp.maximum(h, 0.0)
    h = dw(h, params["wd2"]); h = pw(h, params["wp2"])
    h = bn(h, params["g2"], params["b2"])
    return h


if __name__ == "__main__":
    B, C_in, C_out, L = 2, 4, 8, 16
    kernel_size, stride, padding = 3, 2, 1   # module hardcodes stride=1 inside

    key = jax.random.PRNGKey(0)
    kx, k1, k2, k3, k4 = jax.random.split(key, 5)

    x = jax.random.normal(kx, (B, C_in, L), dtype=jnp.float32)

    params = {
        # depthwise weights: PyTorch shape (C_in, 1, K) -> squeezed to (C_in, K)
        "wd1": 0.1 * jax.random.normal(k1, (C_in, kernel_size), jnp.float32),
        "wd2": 0.1 * jax.random.normal(k3, (C_in, kernel_size), jnp.float32),
        # pointwise weights: PyTorch shape (C_out, C_in, 1) -> (C_out, C_in)
        "wp1": 0.1 * jax.random.normal(k2, (C_in, C_in), jnp.float32),
        "wp2": 0.1 * jax.random.normal(k4, (C_out, C_in), jnp.float32),
        # BatchNorm affine params at init: gamma=1, beta=0 (stored as (C, 1))
        "g1": jnp.ones((C_in, 1), jnp.float32),
        "b1": jnp.zeros((C_in, 1), jnp.float32),
        "g2": jnp.ones((C_out, 1), jnp.float32),
        "b2": jnp.zeros((C_out, 1), jnp.float32),
    }

    out = sepconv1d(x, params, kernel_size=kernel_size, padding=padding)
    out = jax.block_until_ready(out)

    ref = _reference(x, params, kernel_size=kernel_size, padding=padding)
    assert out.shape == (B, C_out, L), out.shape
    assert jnp.allclose(out, ref, atol=1e-4, rtol=1e-4), "mismatch vs reference"

    print("KERNEL_OK")
</pallas_src>

<mosaic_0001>
module attributes {stable_mosaic.version = 11 : i64} {
  func.func @_stage1_kernel(%arg0: i32, %arg1: memref<1x8x128xf32, #tpu.memory_space<vmem>>, %arg2: memref<8x3xf32, #tpu.memory_space<vmem>>, %arg3: memref<8x8xf32, #tpu.memory_space<vmem>>, %arg4: memref<1x8x128xf32, #tpu.memory_space<vmem>>, %arg5: memref<1x8x1xf32, #tpu.memory_space<vmem>>, %arg6: memref<1x8x1xf32, #tpu.memory_space<vmem>>) attributes {dimension_semantics = [#tpu.dimension_semantics<parallel>], iteration_bounds = array<i64: 2>, scalar_prefetch = 0 : i64, scratch_operands = 0 : i64, tpu.core_type = #tpu.core_type<tc>, window_params = [{transform_indices = @transform_0, window_bounds = array<i64: 1, 8, 128>}, {pipeline_mode = #tpu.pipeline_mode<synchronous>, transform_indices = @transform_1, window_bounds = array<i64: 8, 3>}, {pipeline_mode = #tpu.pipeline_mode<synchronous>, transform_indices = @transform_2, window_bounds = array<i64: 8, 8>}, {transform_indices = @transform_3, window_bounds = array<i64: 1, 8, 128>}, {transform_indices = @transform_4, window_bounds = array<i64: 1, 8, 1>}, {transform_indices = @transform_5, window_bounds = array<i64: 1, 8, 1>}]} {
    %c0 = arith.constant 0 : index
    %c0_0 = arith.constant 0 : index
    %c0_1 = arith.constant 0 : index
    %0 = vector.load %arg1[%c0, %c0_0, %c0_1] : memref<1x8x128xf32, #tpu.memory_space<vmem>>, vector<1x8x128xf32>
    %1 = vector.shape_cast %0 : vector<1x8x128xf32> to vector<8x128xf32>
    %cst = arith.constant 0.000000e+00 : f32
    %2 = vector.broadcast %cst : f32 to vector<8x128xf32>
    %3 = arith.maximumf %1, %2 : vector<8x128xf32>
    %c0_2 = arith.constant 0 : index
    %c0_3 = arith.constant 0 : index
    %4 = vector.load %arg2[%c0_2, %c0_3] : memref<8x3xf32, #tpu.memory_space<vmem>>, vector<8x3xf32>
    %5 = tpu.iota {dimensions = array<i32: 1>} : vector<1x128xi32>
    %cst_4 = arith.constant 0.000000e+00 : f32
    %6 = vector.broadcast %cst_4 : f32 to vector<8x128xf32>
    %c1_i32 = arith.constant 1 : i32
    %7 = tpu.dynamic_rotate %3 by %c1_i32 dim 1 : vector<8x128xf32>, i32 -> vector<8x128xf32>
    %8 = vector.extract_strided_slice %4 {offsets = [0, 0], sizes = [8, 1], strides = [1, 1]} : vector<8x3xf32> to vector<8x1xf32>
    %9 = vector.broadcast %8 : vector<8x1xf32> to vector<8x128xf32>
    %10 = arith.mulf %7, %9 : vector<8x128xf32>
    %c1_i32_5 = arith.constant 1 : i32
    %11 = vector.broadcast %c1_i32_5 : i32 to vector<1x128xi32>
    %12 = arith.cmpi sge, %5, %11 : vector<1x128xi32>
    %c16_i32 = arith.constant 16 : i32
    %13 = vector.broadcast %c16_i32 : i32 to vector<1x128xi32>
    %14 = arith.cmpi slt, %5, %13 : vector<1x128xi32>
    %15 = arith.andi %12, %14 : vector<1x128xi1>
    %16 = arith.extui %15 : vector<1x128xi1> to vector<1x128xi32>
    %17 = arith.sitofp %16 : vector<1x128xi32> to vector<1x128xf32>
    %18 = vector.broadcast %17 : vector<1x128xf32> to vector<8x128xf32>
    %19 = arith.mulf %10, %18 : vector<8x128xf32>
    %20 = arith.addf %6, %19 : vector<8x128xf32>
    %21 = vector.extract_strided_slice %4 {offsets = [0, 1], sizes = [8, 1], strides = [1, 1]} : vector<8x3xf32> to vector<8x1xf32>
    %22 = vector.broadcast %21 : vector<8x1xf32> to vector<8x128xf32>
    %23 = arith.mulf %3, %22 : vector<8x128xf32>
    %24 = arith.addf %20, %23 : vector<8x128xf32>
    %c127_i32 = arith.constant 127 : i32
    %25 = tpu.dynamic_rotate %3 by %c127_i32 dim 1 : vector<8x128xf32>, i32 -> vector<8x128xf32>
    %26 = vector.extract_strided_slice %4 {offsets = [0, 2], sizes = [8, 1], strides = [1, 1]} : vector<8x3xf32> to vector<8x1xf32>
    %27 = vector.broadcast %26 : vector<8x1xf32> to vector<8x128xf32>
    %28 = arith.mulf %25, %27 : vector<8x128xf32>
    %c0_i32 = arith.constant 0 : i32
    %29 = vector.broadcast %c0_i32 : i32 to vector<1x128xi32>
    %30 = arith.cmpi sge, %5, %29 : vector<1x128xi32>
    %c15_i32 = arith.constant 15 : i32
    %31 = vector.broadcast %c15_i32 : i32 to vector<1x128xi32>
    %32 = arith.cmpi slt, %5, %31 : vector<1x128xi32>
    %33 = arith.andi %30, %32 : vector<1x128xi1>
    %34 = arith.extui %33 : vector<1x128xi1> to vector<1x128xi32>
    %35 = arith.sitofp %34 : vector<1x128xi32> to vector<1x128xf32>
    %36 = vector.broadcast %35 : vector<1x128xf32> to vector<8x128xf32>
    %37 = arith.mulf %28, %36 : vector<8x128xf32>
    %38 = arith.addf %24, %37 : vector<8x128xf32>
    %c0_6 = arith.constant 0 : index
    %c0_7 = arith.constant 0 : index
    %39 = vector.load %arg3[%c0_6, %c0_7] : memref<8x8xf32, #tpu.memory_space<vmem>>, vector<8x8xf32>
    %cst_8 = arith.constant dense<0.000000e+00> : vector<8x128xf32>
    %40 = tpu.matmul %39, %38, %cst_8 {dimension_numbers = #tpu.dot_dimension_numbers<[1], [0], [0], [1], [0, 0, 1, 1], [], []>} : vector<8x8xf32>, vector<8x128xf32>, vector<8x128xf32> -> vector<8x128xf32>
    %c0_9 = arith.constant 0 : index
    %c0_10 = arith.constant 0 : index
    %c0_11 = arith.constant 0 : index
    %41 = vector.load %arg4[%c0_9, %c0_10, %c0_11] : memref<1x8x128xf32, #tpu.memory_space<vmem>>, vector<1x8x128xf32>
    %42 = vector.shape_cast %41 : vector<1x8x128xf32> to vector<8x128xf32>
    %43 = vector.shape_cast %40 : vector<8x128xf32> to vector<1x8x128xf32>
    tpu.vector_store %arg4[%c0_9, %c0_10, %c0_11], %43 {strides = array<i32>} : memref<1x8x128xf32, #tpu.memory_space<vmem>>, vector<1x8x128xf32>,
    %cst_12 = arith.constant dense<0.000000e+00> : vector<8xf32>
    %44 = vector.multi_reduction <add>, %40, %cst_12 [1] : vector<8x128xf32> to vector<8xf32>
    %45 = vector.shape_cast %44 : vector<8xf32> to vector<8x1xf32>
    %c0_13 = arith.constant 0 : index
    %c0_14 = arith.constant 0 : index
    %c0_15 = arith.constant 0 : index
    %46 = vector.load %arg5[%c0_13, %c0_14, %c0_15] : memref<1x8x1xf32, #tpu.memory_space<vmem>>, vector<1x8x1xf32>
    %47 = vector.shape_cast %46 : vector<1x8x1xf32> to vector<8x1xf32>
    %48 = vector.shape_cast %45 : vector<8x1xf32> to vector<1x8x1xf32>
    tpu.vector_store %arg5[%c0_13, %c0_14, %c0_15], %48 {strides = array<i32>} : memref<1x8x1xf32, #tpu.memory_space<vmem>>, vector<1x8x1xf32>,
    %49 = arith.mulf %40, %40 : vector<8x128xf32>
    %cst_16 = arith.constant dense<0.000000e+00> : vector<8xf32>
    %50 = vector.multi_reduction <add>, %49, %cst_16 [1] : vector<8x128xf32> to vector<8xf32>
    %51 = vector.shape_cast %50 : vector<8xf32> to vector<8x1xf32>
    %c0_17 = arith.constant 0 : index
    %c0_18 = arith.constant 0 : index
    %c0_19 = arith.constant 0 : index
    %52 = vector.load %arg6[%c0_17, %c0_18, %c0_19] : memref<1x8x1xf32, #tpu.memory_space<vmem>>, vector<1x8x1xf32>
    %53 = vector.shape_cast %52 : vector<1x8x1xf32> to vector<8x1xf32>
    %54 = vector.shape_cast %51 : vector<8x1xf32> to vector<1x8x1xf32>
    tpu.vector_store %arg6[%c0_17, %c0_18, %c0_19], %54 {strides = array<i32>} : memref<1x8x1xf32, #tpu.memory_space<vmem>>, vector<1x8x1xf32>,
    return
  }
  func.func @transform_0(%arg0: i32) -> (i32, i32, i32) {
    %c0_i32 = arith.constant 0 : i32
    %c0_i32_0 = arith.constant 0 : i32
    %c0_i32_1 = arith.constant 0 : i32
    return %arg0, %c0_i32, %c0_i32_0 : i32, i32, i32
  }
  func.func @transform_1(%arg0: i32) -> (i32, i32) {
    %c0_i32 = arith.constant 0 : i32
    %c0_i32_0 = arith.constant 0 : i32
    %c0_i32_1 = arith.constant 0 : i32
    return %c0_i32, %c0_i32_0 : i32, i32
  }
  func.func @transform_2(%arg0: i32) -> (i32, i32) {
    %c0_i32 = arith.constant 0 : i32
    %c0_i32_0 = arith.constant 0 : i32
    %c0_i32_1 = arith.constant 0 : i32
    return %c0_i32, %c0_i32_0 : i32, i32
  }
  func.func @transform_3(%arg0: i32) -> (i32, i32, i32) {
    %c0_i32 = arith.constant 0 : i32
    %c0_i32_0 = arith.constant 0 : i32
    %c0_i32_1 = arith.constant 0 : i32
    return %arg0, %c0_i32, %c0_i32_0 : i32, i32, i32
  }
  func.func @transform_4(%arg0: i32) -> (i32, i32, i32) {
    %c0_i32 = arith.constant 0 : i32
    %c0_i32_0 = arith.constant 0 : i32
    %c0_i32_1 = arith.constant 0 : i32
    return %arg0, %c0_i32, %c0_i32_0 : i32, i32, i32
  }
  func.func @transform_5(%arg0: i32) -> (i32, i32, i32) {
    %c0_i32 = arith.constant 0 : i32
    %c0_i32_0 = arith.constant 0 : i32
    %c0_i32_1 = arith.constant 0 : i32
    return %arg0, %c0_i32, %c0_i32_0 : i32, i32, i32
  }
}

</mosaic_0001>

<bundles_post_ra>
// kernel: tpu_custom_call.1
= control target key start
LH: loop header
LB: loop body
LE: loop exit
PB: predicated region body
PF: predicated region fallthrough
CT: control target
= control target key end

     0   :  { %11 = vsyncpa [#allocation3], 0  ;;  %s904_s0 = inlined_call_operand.hbm [shape: f32[2,8,128], index: 0, kind: input, shape index: {}]   ;;  %s905_s1 = inlined_call_operand.vmem [shape: f32[8,3], index: 1, kind: input, shape index: {}]   ;;  %s906_s2 = inlined_call_operand.vmem [shape: f32[8,8], index: 2, kind: input, shape index: {}]   ;;  %s907_s3 = inlined_call_operand.hbm [shape: f32[2,8,128], index: 3, kind: output, shape index: {0}]   ;;  %s908_s4 = inlined_call_operand.vmem [shape: f32[2,8,1], index: 4, kind: output, shape index: {1}]   ;;  %s909_s5 = inlined_call_operand.vmem [shape: f32[2,8,1], index: 5, kind: output, shape index: {2}]  }
   0x1   :  { %13 = vsyncpa [#allocation3 + $0x1], 0 }
   0x2   :  { %14 = vsyncpa [#allocation4], 0 }
   0x3   :  { %16 = vsyncpa [#allocation4 + $0x1], 0  ;;  %s745_s18 = smov 0   ;;  %s747_s19 = smov 0  }
   0x4   :  { %s749_s20 = smov 0   ;;  %s751_s21 = smov 0  }
   0x5 LB: > { %s766_s22 = sadd.s32 4294967295, %s704_s21   ;;  %s531_s23 = sadd.s32 4294967294, %s704_s21   ;;  %s704_s21 = sphi %s751_s21, %s926_s21   ;;  %s700_s20 = sphi %s749_s20, %s925_s20   ;;  %s696_s19 = sphi %s747_s19, %s924_s19   ;;  %s692_s18 = sphi %s745_s18, %s923_s18  }
   0x6   : > { %s770_s24 = sadd.s32 1, %s704_s21   ;;  %s29_s25 = sadd.s32 1, %s700_s20 }
   0x7   : > { %s26_s26 = ssub.s32 %s704_s21, %s770_s24  ;;  %p36_p0 = scmp.ne.s32.totalorder %s700_s20, %s696_s19 }
   0x8   : > { %p27_p1 = scmp.eq.s32.totalorder %s26_s26, 0  ;;  %p37_p2 = scmp.eq.s32.totalorder %s704_s21, 0 }
   0x9   : > { %p42_p3 = scmp.ne.s32.totalorder %s696_s19, %s692_s18  ;;  %p43_p4 = scmp.eq.s32.totalorder %s766_s22, 0 }
   0xa   : > { %s782_s27 = scalar_select %p27_p1, %s700_s20, %s29_s25  }
   0xb   : > { %p784_p5 = por %p37_p2, %p36_p0  ;;  %p788_p6 = por %p43_p4, %p42_p3 }
   0xc   : > { %p108_p7 = scmp.eq.s32.totalorder %s766_s22, 1  ;;  %p114_p8 = scmp.eq.s32.totalorder %s531_s23, 1 }
   0xd   : > { %s913_s29 = scalar_select %p788_p6, 1, 0 }
   0xe   : > { %p567_p10 = scmp.lt.s32.totalorder %s704_s21, 2  ;;  %p795_p11 = por %p108_p7, %p36_p0 }
   0xf   : > { %p799_p12 = por %p114_p8, %p42_p3  ;;  %s192_s7 = sand.u32 1, %s700_s20  }
  0x10   : > { %s914_s30 = scalar_select %p795_p11, 1, 0 }
  0x11   : > { %s915_s6 = scalar_select %p799_p12, 1, 0 }
  0x12   : > { %s535_s8 = sshll.u32 %s704_s21, 7  ;;  %s534_s9 = sshll.u32 %s192_s7, 3 }
  0x13   : > { %s808_s12 = scalar_lea.hbm %s904_s0, %s535_s8  ;;  %s196_s13 = scalar_lea.vmem [#allocation2], %s534_s9 }
  0x14   : > { %s203_s14 = sshll.u32 %s196_s13, 4  ;;  %p812_p13 = pnand %p567_p10, %p784_p5  ;;  %s816_s14 = int_to_ptr.vmem [resolvable:$true] %s203_s14 }
  0x15   : > { %s193_s16 = scalar_lea.sflag [#allocation3], %s192_s7  ;;  %s612_s17 = scalar_lea.hbm %s808_s12, 128 }
  0x16   : > { %p613_p2 = scmp.ne.s32.totalorder %s808_s12, %s612_s17  ;;  %p614_p3 = pneg %p812_p13 }
  0x17   : > { %s617_s26 = scalar_lea.hbm %s904_s0, 256  ;;  %p618_p5 = scmp.lt.s32.totalorder %s808_s12, %s904_s0 }
  0x18   : > { %p615_p4 = pnand %p614_p3, %p613_p2  ;;  %p619_p8 = scmp.lt.s32.totalorder %s617_s26, %s612_s17 }
  0x1a   : > { %p616_p7 = pneg %p615_p4  ;;  %p620_p10 = por %p619_p8, %p618_p5 }
  0x1c   : > { %p621_p9 = pnand %p620_p10, %p616_p7 }
  0x1e   : > { %624 = shalt.err (!%p621_p9)
}
  0x1f   : > { %s625_s7 = scalar_lea.vmem %s816_s14, 128  ;;  %s706_s9 = smov [#allocation2]  }
  0x20   : > { %p626_p0 = scmp.ne.s32.totalorder %s816_s14, %s625_s7  ;;  %s630_s10 = sshll.u32 %s706_s9, 4  ;;  %s631_s10 = int_to_ptr.vmem [resolvable:$false] %s630_s10 }
  0x21   : > { %s632_s11 = scalar_lea.vmem %s631_s10, 256  ;;  %p633_p4 = scmp.lt.s32.totalorder %s816_s14, %s631_s10 }
  0x22   : > { %p628_p1 = pnand %p626_p0, %p614_p3  ;;  %p634_p12 = scmp.lt.s32.totalorder %s632_s11, %s625_s7 }
  0x24   : > { %p629_p2 = pneg %p628_p1  ;;  %p635_p11 = por %p634_p12, %p633_p4 }
  0x26   : > { %p636_p6 = pnand %p635_p11, %p629_p2 }
  0x28   : > { %639 = shalt.err (!%p636_p6)
}
  0x29   : > { %562 = dma.hbm_to_vmem [thread:$0]  (!%p812_p13), %s808_s12, 128, %s816_s14, %s193_s16  }
  0x2a   : > { %p917_p9 = scmp.lt.s32.totalorder %s704_s21, 3  ;;  %p918_p7 = scmp.ge.s32.totalorder %s704_s21, 1 }
  0x2c   : > { %p209_p0 = pnand %p918_p7, %p917_p9 }
  0x2d   : > { %s843_s13 = sand.u32 (!%p209_p0), 1, %s696_s19   ;;  %p919_p6 = scmp.ne.s32.totalorder (!%p209_p0), %s913_s29, 0 }
  0x2e   : > { %212 = sbr.rel (%p209_p0) target bundleno = 527 (0x20f), region = 32  ;;  %s537_s17 = sshll.u32 (!%p209_p0), %s843_s13, 3 }
  0x2f   : > { %s215_s23 = scalar_lea.sflag (!%p209_p0), [#allocation3], %s843_s13  ;;  %s218_s15 = scalar_lea.vmem (!%p209_p0), [#allocation2], %s537_s17 }
  0x33   : > { %683 = dma.done.wait (%p919_p6), %s215_s23, 128  }
  0x34   : > { %685 = vsyncadd (%p919_p6), %s215_s23, 4294967168  ;;  %v707_v0 = vmov 2   ;;  %v708_v1 = vmov 0   ;;  %v709_v2 = vmov 0.0   ;;  %v263_v3 = vld [vmem:[%s905_s1] sm:$0xff]  ;;  %v710_v6 = vmov 1  }
  0x35   : > { %610 = vset.pattern.permute.xlu1 %v707_v0  ;;  %608 = vset.pattern.permute.xlu0 %v708_v1  ;;  %v261_v4 = vld [vmem:[%s218_s15] sm:$0xff]  ;;  %s711_s16 = smov 1   ;;  %s712_s29 = smov 127   ;;  %vm713_vm0 = vmmov 0   ;;  %v264_v7 = vlaneseq  ;;  %vm302_vm5 = vcmask 64512  }
  0x36   : > { %550 = vmatprep.subr.mxu0 %v709_v2  ;;  %290 = vperm.xlu1 %610, %v263_v3   ;;  %v262_v5 = vmax.f32 %v261_v4, 0.0  ;;  %v301_v23 = vld [vmem:[%s906_s2] sm:$0xff]  ;;  %s240_s28 = scalar_lea.vmem [#allocation5], %s537_s17  ;;  %s545_s8 = sshll.u32 %s766_s22, 7 }
  0x37   : > { %270 = vperm.xlu0 %608, %v263_v3   ;;  %552 = vmatprep.mubr.msk.f32.mxu0 %vm713_vm0, %v709_v2  ;;  %v265_v8 = vand.u32 127, %v264_v7  ;;  %s405_s10 = scalar_lea.hbm %s907_s3, %s545_s8  ;;  %s407_s11 = sshll.u32 %s240_s28, 4  ;;  %s408_s11 = int_to_ptr.vmem [resolvable:$true] %s407_s11 }
  0x38   : > { %s386_s23 = scalar_lea.sflag [#allocation4], %s843_s13  ;;  %s640_s15 = scalar_lea.vmem %s408_s11, 128 }
  0x39   : > { %vm274_vm1 = vcmp.ge.s32.totalorder %v265_v8, 1  ;;  %vm275_vm2 = vcmp.lt.s32.totalorder %v265_v8, 16  ;;  %vm295_vm4 = vcmp.lt.s32.totalorder %v265_v8, 15  ;;  %p641_p11 = scmp.ne.s32.totalorder %s408_s11, %s640_s15  ;;  %p920_p12 = scmp.ne.s32.totalorder %s914_s30, 0 }
  0x3a   : > { %266 = vrot.lane.b32.xlu1 %v262_v5, %s711_s16  ;;  %vm276_vm3 = vmand %vm274_vm1, %vm275_vm2  ;;  %v542_v17 = vsel %vm295_vm4, 1.0, %v709_v2  ;;  %s714_s12 = smov [#allocation5]  }
  0x3b   : > { %609 = vset.pattern.permute.xlu0 %v710_v6  ;;  %v541_v11 = vsel %vm276_vm3, 1.0, %v709_v2  ;;  %p642_p13 = pnand %p641_p11, %p920_p12  ;;  %s644_s17 = sshll.u32 %s714_s12, 4  ;;  %s645_s17 = int_to_ptr.vmem [resolvable:$false] %s644_s17 }
  0x3c   : > { %282 = vperm.xlu0 %609, %v263_v3   ;;  %s646_s14 = scalar_lea.vmem %s645_s17, 256  ;;  %p647_p3 = scmp.lt.s32.totalorder %s408_s11, %s645_s17 }
  0x3d   : > { %p643_p1 = pneg %p642_p13  ;;  %p648_p5 = scmp.lt.s32.totalorder %s646_s14, %s640_s15 }
  0x3e   : > { %287 = vrot.lane.b32.xlu1 %v262_v5, %s712_s29 }
  0x3f   : > { %p649_p8 = por %p648_p5, %p647_p3 }
  0x40   : > { %611 = vset.pattern.permute.xlu0 %v707_v0 }
  0x41   : > { %p650_p10 = pnand %p649_p8, %p643_p1 }
  0xb1   : > { %v291_v9 = vpop.permute.xlu1 %290 }
  0xb2   : > { %v271_v10 = vpop.permute.xlu0 %270 }
  0xb5   : > { %v267_v12 = vpop.permute.xlu1 %266 }
  0xb6   : > { %v273_v13 = vmul.f32 %v271_v10, %v267_v12 }
  0xb7   : > { %v283_v14 = vpop.permute.xlu0 %282 }
  0xb8   : > { %v279_v15 = vmul.f32 %v541_v11, %v273_v13  ;;  %v285_v16 = vmul.f32 %v283_v14, %v262_v5 }
  0xb9   : > { %v288_v18 = vpop.permute.xlu1 %287 }
  0xba   : > { %v293_v19 = vmul.f32 %v291_v9, %v288_v18  ;;  %v286_v20 = vadd.f32 %v285_v16, %v279_v15 }
  0xbc   : > { %v299_v21 = vmul.f32 %v542_v17, %v293_v19 }
  0xbe   : > { %v300_v22 = vadd.f32 %v299_v21, %v286_v20 }
  0xc0   : > { %551 = vmatpush3.msra.mxu0 %v300_v22 }
  0xc1   : > { %553 = vmatmul.mubr.msk.f32.vlgmr.msra.gmra.mxu0 %vm302_vm5, %v301_v23 }
 0x181   : > { %v372_v24 = vpop.f32.mrf.mxu0 }
 0x182   : > { %376 = vst [vmem:[%s240_s28] sm:$0xff] %v372_v24  ;;  %377 = vadd.xlane.f32.xlu0 %v372_v24  ;;  %v381_v25 = vmul.f32 %v372_v24, %v372_v24 }
 0x183   : > { %v554_v26 = vpop.f32.mrf.mxu0 }
 0x184   : > { %382 = vadd.xlane.f32.xlu1 %v381_v25 }
 0x185   : > { %653 = shalt.err (!%p650_p10)
}
 0x186   : > { %s654_s16 = scalar_lea.hbm %s405_s10, 128  ;;  %s658_s25 = scalar_lea.hbm %s907_s3, 256 }
 0x187   : > { %p655_p2 = scmp.ne.s32.totalorder %s405_s10, %s654_s16  ;;  %p659_p7 = scmp.lt.s32.totalorder %s405_s10, %s907_s3 }
 0x188   : > { %p660_p0 = scmp.lt.s32.totalorder %s658_s25, %s654_s16 }
 0x189   : > { %p656_p4 = pnand %p655_p2, %p920_p12 }
 0x18a   : > { %p661_p6 = por %p660_p0, %p659_p7 }
 0x18b   : > { %p657_p9 = pneg %p656_p4 }
 0x18d   : > { %p662_p11 = pnand %p661_p6, %p657_p9 }
 0x18f   : > { %665 = shalt.err (!%p662_p11)
}
 0x190   : > { %557 = dma.vmem_to_hbm [thread:$0]  (%p920_p12), %s408_s11, 128, %s405_s10, %s386_s23   ;;  %vm379_vm6 = vcmask 7168  }
 0x191   : > { %p253_p13 = scmp.lt.s32.totalorder %s766_s22, 1 }
 0x193   : > { %s928_s22 = smov (!%p253_p13, %s766_s22), 1 }
 0x194   : > { %s539_s8 = sshll.u32 %s928_s22, 3 }
 0x195   : > { %s256_s15 = scalar_lea.vmem %s908_s4, %s539_s8  ;;  %s260_s14 = scalar_lea.vmem %s909_s5, %s539_s8 }
 0x20b   : > { %v378_v27 = vpop.xlane.xlu0 %377 }
 0x20c   : > { %380 = vst.msk [vmem:[%s256_s15] sm:$0xff] %vm379_vm6, %v378_v27 }
 0x20d   : > { %v383_v28 = vpop.xlane.xlu1 %382 }
 0x20e   : > { %384 = vst.msk [vmem:[%s260_s14] sm:$0xff] %vm379_vm6, %v383_v28 }
 0x20f PF: > { %s425_s30 = sand.u32 1, %s692_s18   ;;  %p921_p12 = scmp.ne.s32.totalorder %s915_s6, 0 }
 0x210   : > { %p922_p1 = scmp.ge.s32.totalorder %s704_s21, 2  ;;  %s426_s22 = scalar_lea.sflag [#allocation4], %s425_s30 }
 0x212   : > { %p564_p3 = pnand %p922_p1, %p921_p12 }
 0x214   : > { %p565_p5 = pneg %p564_p3 }
 0x216   : > { %687 = dma.done.wait (%p565_p5), %s426_s22, 128  }
 0x217   : > { %689 = vsyncadd (%p565_p5), %s426_s22, 4294967168  ;;  %p19_p8 = scmp.ge.s32.totalorder %s770_s24, 4   ;;  %s923_s18 = smov %s696_s19 }
 0x218   : > { %s924_s19 = smov %s700_s20  ;;  %s925_s20 = smov %s782_s27 }
 0x219   : > { %s926_s21 = smov %s770_s24  ;;  %21 = sbr.rel (!%p19_p8) target bundleno = 5 (0x5), region = 101 }
 0x21e   :  { %445 = vsyncpa [#allocation3], 1 }
 0x21f   :  { %447 = vsyncpa [#allocation3 + $0x1], 1 }
 0x220   :  { %448 = vsyncpa [#allocation4], 1 }
 0x221   :  { %450 = vsyncpa [#allocation4 + $0x1], 1 }

</bundles_post_ra>
